<compile_context>
chip_gen: v7x
topology: tpu7x:2x2x1
jax: 0.10.0
libtpu: 0.0.40
codegen_flags: <defaults>
</compile_context>

<pallas_src>
import jax
import jax.numpy as jnp
from jax.experimental import pallas as pl
from jax.experimental.pallas import tpu as pltpu


def mine_kernel(noise_ref, sample_ref, wn_ref, ws_ref, b1_ref,
                w2_ref, b2_ref, w3_ref, b3_ref, o_ref):
    def lrelu(v):
        return jnp.maximum(v, 0.2 * v)

    # fc1: two tiny-K MXU passes (K = noise_size / sample_size) + bias.
    h = jnp.dot(noise_ref[...], wn_ref[...], preferred_element_type=jnp.float32)
    h = h + jnp.dot(sample_ref[...], ws_ref[...],
                    preferred_element_type=jnp.float32)
    h = lrelu(h + b1_ref[...])

    # fc2 + leaky_relu
    h = lrelu(jnp.dot(h, w2_ref[...], preferred_element_type=jnp.float32)
              + b2_ref[...])

    # fc3: narrow output -- keep the batch on the lane axis so the store is
    # lane-dense without any 128-wide zero padding.  [out_dim, tb]
    y = jax.lax.dot_general(
        w3_ref[...], h,
        dimension_numbers=(((1,), (1,)), ((), ())),
        preferred_element_type=jnp.float32)
    o_ref[...] = lrelu(y + b3_ref[...])


def mine_forward(noise, sample, w_noise, w_sample, b1, w2, b2, w3, b3,
                 *, block_b=512):
    """Runs the Mine forward pass with a batch-tiled Pallas kernel.

    Weights are in PyTorch nn.Linear layout: w_* is [out_features, in_features].
    Returns [B, output_size].
    """
    B = noise.shape[0]
    H = w2.shape[0]                 # hidden_size
    out_dim = w3.shape[0]           # output_size
    noise_size = w_noise.shape[1]
    sample_size = w_sample.shape[1]

    f32 = jnp.float32
    noise = noise.astype(f32)
    sample = sample.astype(f32)
    wn = w_noise.T.astype(f32)                       # [noise_size, H]
    ws = w_sample.T.astype(f32)                      # [sample_size, H]
    b1r = b1.astype(f32).reshape(1, H)
    w2t = w2.T.astype(f32)                           # [H, H]
    b2r = b2.astype(f32).reshape(1, H)
    w3f = w3.astype(f32)                             # [out_dim, H]
    b3r = b3.astype(f32).reshape(out_dim, 1)

    if B <= block_b:
        # Single grid step; block shapes equal the full array dims, so no
        # batch padding is needed at all.
        tb = B
        n_blocks = 1
        Bp = B
    else:
        # Multi-step path: tile must be a multiple of 128 (lane-dense output
        # store + (8,128) sublane rule on the input tiles).
        tb = max(128, (block_b // 128) * 128)
        n_blocks = pl.cdiv(B, tb)
        Bp = n_blocks * tb
        if Bp != B:
            noise = jnp.pad(noise, ((0, Bp - B), (0, 0)))
            sample = jnp.pad(sample, ((0, Bp - B), (0, 0)))

    out = pl.pallas_call(
        mine_kernel,
        out_shape=jax.ShapeDtypeStruct((out_dim, Bp), f32),
        grid=(n_blocks,),
        in_specs=[
            pl.BlockSpec((tb, noise_size), lambda i: (i, 0)),   # noise tile
            pl.BlockSpec((tb, sample_size), lambda i: (i, 0)),  # sample tile
            pl.BlockSpec((noise_size, H), lambda i: (0, 0)),    # W1_noise
            pl.BlockSpec((sample_size, H), lambda i: (0, 0)),   # W1_sample
            pl.BlockSpec((1, H), lambda i: (0, 0)),             # b1
            pl.BlockSpec((H, H), lambda i: (0, 0)),             # W2
            pl.BlockSpec((1, H), lambda i: (0, 0)),             # b2
            pl.BlockSpec((out_dim, H), lambda i: (0, 0)),       # W3 (unpadded)
            pl.BlockSpec((out_dim, 1), lambda i: (0, 0)),       # b3
        ],
        out_specs=pl.BlockSpec((out_dim, tb), lambda i: (0, i)),
        compiler_params=pltpu.CompilerParams(
            dimension_semantics=("parallel",)),
    )(noise, sample, wn, ws, b1r, w2t, b2r, w3f, b3r)

    return out[:, :B].T                                # [B, out_dim]


def _reference(noise, sample, w_noise, w_sample, b1, w2, b2, w3, b3):
    hi = jax.lax.Precision.HIGHEST

    def lrelu(v):
        return jnp.where(v >= 0.0, v, 0.2 * v)

    x = lrelu(jnp.dot(noise, w_noise.T, precision=hi)
              + jnp.dot(sample, w_sample.T, precision=hi) + b1)
    x = lrelu(jnp.dot(x, w2.T, precision=hi) + b2)
    x = lrelu(jnp.dot(x, w3.T, precision=hi) + b3)
    return x


if __name__ == "__main__":
    # Module defaults: noise_size=3, sample_size=2, output_size=1, hidden=128.
    B, NOISE, SAMPLE, HID, OUT = 300, 3, 2, 128, 1

    key = jax.random.PRNGKey(0)
    kn, ks, kwn, kws, kw2, kw3, kn2, ks2 = jax.random.split(key, 8)

    # Deterministic kaiming-normal-like init (std = sqrt(2 / fan_in)),
    # zero biases, as in the module.
    def kaiming(k, shape):
        fan_in = shape[1]
        return jax.random.normal(k, shape, jnp.float32) * jnp.sqrt(2.0 / fan_in)

    noise = jax.random.normal(kn, (B, NOISE), dtype=jnp.float32)
    sample = jax.random.normal(ks, (B, SAMPLE), dtype=jnp.float32)

    w_noise = kaiming(kwn, (HID, NOISE))
    w_sample = kaiming(kws, (HID, SAMPLE))
    b1 = jnp.zeros((HID,), jnp.float32)
    w2 = kaiming(kw2, (HID, HID))
    b2 = jnp.zeros((HID,), jnp.float32)
    w3 = kaiming(kw3, (OUT, HID))
    b3 = jnp.zeros((OUT,), jnp.float32)

    # --- Small batch: single grid step, no padding. ---
    out = jax.block_until_ready(
        mine_forward(noise, sample, w_noise, w_sample, b1, w2, b2, w3, b3))
    ref = _reference(noise, sample, w_noise, w_sample, b1, w2, b2, w3, b3)
    assert out.shape == (B, OUT), out.shape
    assert jnp.allclose(out, ref, atol=2e-3, rtol=2e-3), \
        float(jnp.max(jnp.abs(out - ref)))

    # --- Larger batch: multi-block path (tb=512, even block count, padding). ---
    B2 = 1000
    noise2 = jax.random.normal(kn2, (B2, NOISE), dtype=jnp.float32)
    sample2 = jax.random.normal(ks2, (B2, SAMPLE), dtype=jnp.float32)
    out2 = jax.block_until_ready(
        mine_forward(noise2, sample2, w_noise, w_sample, b1, w2, b2, w3, b3))
    ref2 = _reference(noise2, sample2, w_noise, w_sample, b1, w2, b2, w3, b3)
    assert out2.shape == (B2, OUT), out2.shape
    assert jnp.allclose(out2, ref2, atol=2e-3, rtol=2e-3), \
        float(jnp.max(jnp.abs(out2 - ref2)))

    print("KERNEL_OK")
</pallas_src>

<mosaic_0001>
module attributes {stable_mosaic.version = 11 : i64} {
  func.func @mine_kernel(%arg0: i32, %arg1: memref<300x3xf32, #tpu.memory_space<vmem>>, %arg2: memref<300x2xf32, #tpu.memory_space<vmem>>, %arg3: memref<3x128xf32, #tpu.memory_space<vmem>>, %arg4: memref<2x128xf32, #tpu.memory_space<vmem>>, %arg5: memref<1x128xf32, #tpu.memory_space<vmem>>, %arg6: memref<128x128xf32, #tpu.memory_space<vmem>>, %arg7: memref<1x128xf32, #tpu.memory_space<vmem>>, %arg8: memref<1x128xf32, #tpu.memory_space<vmem>>, %arg9: memref<1x1xf32, #tpu.memory_space<vmem>>, %arg10: memref<1x300xf32, #tpu.memory_space<vmem>>) attributes {dimension_semantics = [#tpu.dimension_semantics<parallel>], iteration_bounds = array<i64: 1>, scalar_prefetch = 0 : i64, scratch_operands = 0 : i64, tpu.core_type = #tpu.core_type<tc>, window_params = [{transform_indices = @transform_0, window_bounds = array<i64: 300, 3>}, {transform_indices = @transform_1, window_bounds = array<i64: 300, 2>}, {pipeline_mode = #tpu.pipeline_mode<synchronous>, transform_indices = @transform_2, window_bounds = array<i64: 3, 128>}, {pipeline_mode = #tpu.pipeline_mode<synchronous>, transform_indices = @transform_3, window_bounds = array<i64: 2, 128>}, {pipeline_mode = #tpu.pipeline_mode<synchronous>, transform_indices = @transform_4, window_bounds = array<i64: 1, 128>}, {pipeline_mode = #tpu.pipeline_mode<synchronous>, transform_indices = @transform_5, window_bounds = array<i64: 128, 128>}, {pipeline_mode = #tpu.pipeline_mode<synchronous>, transform_indices = @transform_6, window_bounds = array<i64: 1, 128>}, {pipeline_mode = #tpu.pipeline_mode<synchronous>, transform_indices = @transform_7, window_bounds = array<i64: 1, 128>}, {pipeline_mode = #tpu.pipeline_mode<synchronous>, transform_indices = @transform_8, window_bounds = array<i64: 1, 1>}, {transform_indices = @transform_9, window_bounds = array<i64: 1, 300>}]} {
    %c0 = arith.constant 0 : index
    %c0_0 = arith.constant 0 : index
    %0 = vector.load %arg1[%c0, %c0_0] : memref<300x3xf32, #tpu.memory_space<vmem>>, vector<300x3xf32>
    %c0_1 = arith.constant 0 : index
    %c0_2 = arith.constant 0 : index
    %1 = vector.load %arg3[%c0_1, %c0_2] : memref<3x128xf32, #tpu.memory_space<vmem>>, vector<3x128xf32>
    %cst = arith.constant dense<0.000000e+00> : vector<300x128xf32>
    %2 = tpu.matmul %0, %1, %cst {dimension_numbers = #tpu.dot_dimension_numbers<[1], [0], [0], [1], [0, 0, 1, 1], [], []>} : vector<300x3xf32>, vector<3x128xf32>, vector<300x128xf32> -> vector<300x128xf32>
    %c0_3 = arith.constant 0 : index
    %c0_4 = arith.constant 0 : index
    %3 = vector.load %arg2[%c0_3, %c0_4] : memref<300x2xf32, #tpu.memory_space<vmem>>, vector<300x2xf32>
    %c0_5 = arith.constant 0 : index
    %c0_6 = arith.constant 0 : index
    %4 = vector.load %arg4[%c0_5, %c0_6] : memref<2x128xf32, #tpu.memory_space<vmem>>, vector<2x128xf32>
    %cst_7 = arith.constant dense<0.000000e+00> : vector<300x128xf32>
    %5 = tpu.matmul %3, %4, %cst_7 {dimension_numbers = #tpu.dot_dimension_numbers<[1], [0], [0], [1], [0, 0, 1, 1], [], []>} : vector<300x2xf32>, vector<2x128xf32>, vector<300x128xf32> -> vector<300x128xf32>
    %6 = arith.addf %2, %5 : vector<300x128xf32>
    %c0_8 = arith.constant 0 : index
    %c0_9 = arith.constant 0 : index
    %7 = vector.load %arg5[%c0_8, %c0_9] : memref<1x128xf32, #tpu.memory_space<vmem>>, vector<1x128xf32>
    %8 = vector.broadcast %7 : vector<1x128xf32> to vector<300x128xf32>
    %9 = arith.addf %6, %8 : vector<300x128xf32>
    %cst_10 = arith.constant 2.000000e-01 : f32
    %10 = vector.broadcast %cst_10 : f32 to vector<300x128xf32>
    %11 = arith.mulf %10, %9 : vector<300x128xf32>
    %12 = arith.maximumf %9, %11 : vector<300x128xf32>
    %c0_11 = arith.constant 0 : index
    %c0_12 = arith.constant 0 : index
    %13 = vector.load %arg6[%c0_11, %c0_12] : memref<128x128xf32, #tpu.memory_space<vmem>>, vector<128x128xf32>
    %cst_13 = arith.constant dense<0.000000e+00> : vector<300x128xf32>
    %14 = tpu.matmul %12, %13, %cst_13 {dimension_numbers = #tpu.dot_dimension_numbers<[1], [0], [0], [1], [0, 0, 1, 1], [], []>} : vector<300x128xf32>, vector<128x128xf32>, vector<300x128xf32> -> vector<300x128xf32>
    %c0_14 = arith.constant 0 : index
    %c0_15 = arith.constant 0 : index
    %15 = vector.load %arg7[%c0_14, %c0_15] : memref<1x128xf32, #tpu.memory_space<vmem>>, vector<1x128xf32>
    %16 = vector.broadcast %15 : vector<1x128xf32> to vector<300x128xf32>
    %17 = arith.addf %14, %16 : vector<300x128xf32>
    %cst_16 = arith.constant 2.000000e-01 : f32
    %18 = vector.broadcast %cst_16 : f32 to vector<300x128xf32>
    %19 = arith.mulf %18, %17 : vector<300x128xf32>
    %20 = arith.maximumf %17, %19 : vector<300x128xf32>
    %c0_17 = arith.constant 0 : index
    %c0_18 = arith.constant 0 : index
    %21 = vector.load %arg8[%c0_17, %c0_18] : memref<1x128xf32, #tpu.memory_space<vmem>>, vector<1x128xf32>
    %cst_19 = arith.constant dense<0.000000e+00> : vector<1x300xf32>
    %22 = tpu.matmul %21, %20, %cst_19 {dimension_numbers = #tpu.dot_dimension_numbers<[1], [1], [0], [0], [0, 0, 1, 0], [], []>} : vector<1x128xf32>, vector<300x128xf32>, vector<1x300xf32> -> vector<1x300xf32>
    %c0_20 = arith.constant 0 : index
    %c0_21 = arith.constant 0 : index
    %23 = vector.load %arg9[%c0_20, %c0_21] : memref<1x1xf32, #tpu.memory_space<vmem>>, vector<1x1xf32>
    %24 = vector.broadcast %23 : vector<1x1xf32> to vector<1x300xf32>
    %25 = arith.addf %22, %24 : vector<1x300xf32>
    %cst_22 = arith.constant 2.000000e-01 : f32
    %26 = vector.broadcast %cst_22 : f32 to vector<1x300xf32>
    %27 = arith.mulf %26, %25 : vector<1x300xf32>
    %28 = arith.maximumf %25, %27 : vector<1x300xf32>
    %c0_23 = arith.constant 0 : index
    %c0_24 = arith.constant 0 : index
    %29 = vector.load %arg10[%c0_23, %c0_24] : memref<1x300xf32, #tpu.memory_space<vmem>>, vector<1x300xf32>
    tpu.vector_store %arg10[%c0_23, %c0_24], %28 {strides = array<i32>} : memref<1x300xf32, #tpu.memory_space<vmem>>, vector<1x300xf32>,
    return
  }
  func.func @transform_0(%arg0: i32) -> (i32, i32) {
    %c0_i32 = arith.constant 0 : i32
    %c0_i32_0 = arith.constant 0 : i32
    return %arg0, %c0_i32 : i32, i32
  }
  func.func @transform_1(%arg0: i32) -> (i32, i32) {
    %c0_i32 = arith.constant 0 : i32
    %c0_i32_0 = arith.constant 0 : i32
    return %arg0, %c0_i32 : i32, i32
  }
  func.func @transform_2(%arg0: i32) -> (i32, i32) {
    %c0_i32 = arith.constant 0 : i32
    %c0_i32_0 = arith.constant 0 : i32
    %c0_i32_1 = arith.constant 0 : i32
    return %c0_i32, %c0_i32_0 : i32, i32
  }
  func.func @transform_3(%arg0: i32) -> (i32, i32) {
    %c0_i32 = arith.constant 0 : i32
    %c0_i32_0 = arith.constant 0 : i32
    %c0_i32_1 = arith.constant 0 : i32
    return %c0_i32, %c0_i32_0 : i32, i32
  }
  func.func @transform_4(%arg0: i32) -> (i32, i32) {
    %c0_i32 = arith.constant 0 : i32
    %c0_i32_0 = arith.constant 0 : i32
    %c0_i32_1 = arith.constant 0 : i32
    return %c0_i32, %c0_i32_0 : i32, i32
  }
  func.func @transform_5(%arg0: i32) -> (i32, i32) {
    %c0_i32 = arith.constant 0 : i32
    %c0_i32_0 = arith.constant 0 : i32
    %c0_i32_1 = arith.constant 0 : i32
    return %c0_i32, %c0_i32_0 : i32, i32
  }
  func.func @transform_6(%arg0: i32) -> (i32, i32) {
    %c0_i32 = arith.constant 0 : i32
    %c0_i32_0 = arith.constant 0 : i32
    %c0_i32_1 = arith.constant 0 : i32
    return %c0_i32, %c0_i32_0 : i32, i32
  }
  func.func @transform_7(%arg0: i32) -> (i32, i32) {
    %c0_i32 = arith.constant 0 : i32
    %c0_i32_0 = arith.constant 0 : i32
    %c0_i32_1 = arith.constant 0 : i32
    return %c0_i32, %c0_i32_0 : i32, i32
  }
  func.func @transform_8(%arg0: i32) -> (i32, i32) {
    %c0_i32 = arith.constant 0 : i32
    %c0_i32_0 = arith.constant 0 : i32
    %c0_i32_1 = arith.constant 0 : i32
    return %c0_i32, %c0_i32_0 : i32, i32
  }
  func.func @transform_9(%arg0: i32) -> (i32, i32) {
    %c0_i32 = arith.constant 0 : i32
    %c0_i32_0 = arith.constant 0 : i32
    return %c0_i32, %arg0 : i32, i32
  }
}

</mosaic_0001>

<bundles_post_ra>
// kernel: tpu_custom_call.1
= control target key start
LH: loop header
LB: loop body
LE: loop exit
PB: predicated region body
PF: predicated region fallthrough
CT: control target
= control target key end

     0   :  { %s2704_s0 = inlined_call_operand.vmem [shape: f32[300,3], index: 0, kind: input, shape index: {}]   ;;  %s2705_s1 = inlined_call_operand.vmem [shape: f32[300,2], index: 1, kind: input, shape index: {}]   ;;  %s2706_s2 = inlined_call_operand.vmem [shape: f32[3,128], index: 2, kind: input, shape index: {}]   ;;  %s2707_s3 = inlined_call_operand.vmem [shape: f32[2,128], index: 3, kind: input, shape index: {}]   ;;  %s2708_s4 = inlined_call_operand.vmem [shape: f32[1,128], index: 4, kind: input, shape index: {}]   ;;  %s2709_s5 = inlined_call_operand.vmem [shape: f32[128,128], index: 5, kind: input, shape index: {}]   ;;  %s2710_s6 = inlined_call_operand.vmem [shape: f32[1,128], index: 6, kind: input, shape index: {}]   ;;  %s2711_s7 = inlined_call_operand.vmem [shape: f32[1,128], index: 7, kind: input, shape index: {}]   ;;  %s2712_s8 = inlined_call_operand.<no memory space> [shape: f32[1,1], index: 8, kind: input, shape index: {}]   ;;  %s2713_s9 = inlined_call_operand.hbm [shape: f32[1,300], index: 9, kind: output, shape index: {}]  }
   0x1   :  { %v14_v0 = vstv %s2712_s8 }
   0x2   :  { %15 = vst [vmem:[#allocation2] sm:$0x1] %v14_v0 }
   0x3   :  { %v112_v1 = vld [vmem:[%s2707_s3] sm:$0x3]  ;;  %vm228_vm0 = vcmask 1041408   ;;  %vm113_vm1 = vcmask 15360   ;;  %v75_v3 = vld [vmem:[%s2705_s1 + $0x8] sm:$0xff]  ;;  %v76_v4 = vld [vmem:[%s2705_s1 + $0x10] sm:$0xff] }
   0x4   :  { %v74_v2 = vld [vmem:[%s2705_s1] sm:$0xff]  ;;  %1793 = vmatprep.subr.msk.mxu0 %vm228_vm0, %v112_v1  ;;  %vm602_vm2 = vcmask 1042432   ;;  %v77_v6 = vld [vmem:[%s2705_s1 + $0x18] sm:$0xff]  ;;  %v79_v8 = vld [vmem:[%s2705_s1 + $0x28] sm:$0xff] }
   0x5   :  { %1795 = vmatprep.mubr.msk.f32.mxu0 %vm113_vm1, %v74_v2  ;;  %1794 = vmatpush3.msk.msra.mxu0 %vm228_vm0, %v112_v1  ;;  %v73_v5 = vld [vmem:[%s2706_s2] sm:$0x7]  ;;  %v80_v9 = vld [vmem:[%s2705_s1 + $0x30] sm:$0xff]  ;;  %v81_v10 = vld [vmem:[%s2705_s1 + $0x38] sm:$0xff] }
   0x6   :  { %1796 = vmatmul.mubr.msk.f32.vlgmr.msra.gmra.mrb[0].mxu0 %vm113_vm1, %v75_v3  ;;  %1852 = vmatprep.subr.msk.mxu0 %vm602_vm2, %v73_v5  ;;  %v78_v7 = vld [vmem:[%s2705_s1 + $0x20] sm:$0xff]  ;;  %v83_v12 = vld [vmem:[%s2705_s1 + $0x48] sm:$0xff]  ;;  %v84_v13 = vld [vmem:[%s2705_s1 + $0x50] sm:$0xff] }
   0x7   :  { %1798 = vmatprep.mubr.msk.f32.mxu0 %vm113_vm1, %v76_v4  ;;  %1853 = vmatpush3.msk.msra.mxu0 %vm602_vm2, %v73_v5  ;;  %v82_v11 = vld [vmem:[%s2705_s1 + $0x40] sm:$0xff]  ;;  %v85_v14 = vld [vmem:[%s2705_s1 + $0x58] sm:$0xff]  ;;  %v87_v16 = vld [vmem:[%s2705_s1 + $0x68] sm:$0xff] }
   0x8   :  { %v86_v15 = vld [vmem:[%s2705_s1 + $0x60] sm:$0xff]  ;;  %v88_v17 = vld [vmem:[%s2705_s1 + $0x70] sm:$0xff]  ;;  %v983_v19 = vld [vmem:[%s2709_s5 + $0x8] sm:$0xff] }
   0x9   :  { %v982_v18 = vld [vmem:[%s2709_s5] sm:$0xff]  ;;  %v984_v20 = vld [vmem:[%s2709_s5 + $0x10] sm:$0xff]  ;;  %v985_v22 = vld [vmem:[%s2709_s5 + $0x18] sm:$0xff] }
   0xa   :  { %1799 = vmatmul.mubr.msk.f32.gmra.mrb[2].mxu0 %vm113_vm1, %v77_v6  ;;  %v2015_v21 = vpack.c.bf16 %v983_v19, %v982_v18  ;;  %v89_v23 = vld [vmem:[%s2705_s1 + $0x78] sm:$0xff]  ;;  %v2019_v24 = vpack.c.bf16 %v985_v22, %v984_v20  ;;  %v986_v25 = vld [vmem:[%s2709_s5 + $0x20] sm:$0xff]  ;;  %v987_v26 = vld [vmem:[%s2709_s5 + $0x28] sm:$0xff] }
   0xb   :  { %1801 = vmatprep.mubr.msk.f32.mxu0 %vm113_vm1, %v78_v7  ;;  %v90_v27 = vld [vmem:[%s2705_s1 + $0x80] sm:$0xff] }
   0xc   :  { %2016 = vmatprep.subr.bf16.mxu1 %v2015_v21 }
   0xd   :  { %2018 = vmatpush3.bf16.msra.mxu1 %v2015_v21 }
   0xe   :  { %1802 = vmatmul.mubr.msk.f32.gmra.mrb[4].mxu0 %vm113_vm1, %v79_v8 }
   0xf   :  { %1804 = vmatprep.mubr.msk.f32.mxu0 %vm113_vm1, %v80_v9 }
  0x12   :  { %1805 = vmatmul.mubr.msk.f32.gmra.mrb[6].mxu0 %vm113_vm1, %v81_v10 }
  0x13   :  { %1807 = vmatprep.mubr.msk.f32.mxu0 %vm113_vm1, %v82_v11 }
  0x16   :  { %1808 = vmatmul.mubr.msk.f32.gmra.mrb[8].mxu0 %vm113_vm1, %v83_v12 }
  0x17   :  { %1810 = vmatprep.mubr.msk.f32.mxu0 %vm113_vm1, %v84_v13 }
  0x1a   :  { %1811 = vmatmul.mubr.msk.f32.gmra.mrb[10].mxu0 %vm113_vm1, %v85_v14 }
  0x1b   :  { %1813 = vmatprep.mubr.msk.f32.mxu0 %vm113_vm1, %v86_v15 }
  0x1e   :  { %1814 = vmatmul.mubr.msk.f32.gmra.mrb[12].mxu0 %vm113_vm1, %v87_v16 }
  0x1f   :  { %1816 = vmatprep.mubr.msk.f32.mxu0 %vm113_vm1, %v88_v17 }
  0x20   :  { %16 = vsyncpa [#allocation4], 0  ;;  %2020 = vmatprep.subr.bf16.mxu1 %v2019_v24  ;;  %v2023_v28 = vpack.c.bf16 %v987_v26, %v986_v25  ;;  %v91_v29 = vld [vmem:[%s2705_s1 + $0x88] sm:$0xff]  ;;  %v988_v30 = vld [vmem:[%s2709_s5 + $0x30] sm:$0xff]  ;;  %vm487_vm3 = vcmask 23552   ;;  %vm2159_vm4 = vmmov 0  }
  0x21   :  { %v989_v31 = vld [vmem:[%s2709_s5 + $0x38] sm:$0xff]  ;;  %v92_v32 = vld [vmem:[%s2705_s1 + $0x90] sm:$0xff]  ;;  %2022 = vmatpush3.bf16.msra.mxu1 %v2019_v24  ;;  %v990_v35 = vld [vmem:[%s2709_s5 + $0x40] sm:$0xff] }
  0x22   :  { %1817 = vmatmul.mubr.msk.f32.gmra.mrb[14].mxu0 %vm113_vm1, %v89_v23  ;;  %2024 = vmatprep.subr.bf16.mxu1 %v2023_v28  ;;  %v2027_v33 = vpack.c.bf16 %v989_v31, %v988_v30  ;;  %v93_v34 = vld [vmem:[%s2705_s1 + $0x98] sm:$0xff]  ;;  %v991_v36 = vld [vmem:[%s2709_s5 + $0x48] sm:$0xff]  ;;  %v94_v37 = vld [vmem:[%s2705_s1 + $0xa0] sm:$0xff] }
  0x23   :  { %1819 = vmatprep.mubr.msk.f32.mxu0 %vm113_vm1, %v90_v27  ;;  %v2031_v38 = vpack.c.bf16 %v991_v36, %v990_v35  ;;  %v95_v39 = vld [vmem:[%s2705_s1 + $0xa8] sm:$0xff]  ;;  %v992_v40 = vld [vmem:[%s2709_s5 + $0x50] sm:$0xff]  ;;  %v993_v41 = vld [vmem:[%s2709_s5 + $0x58] sm:$0xff] }
  0x24   :  { %v96_v42 = vld [vmem:[%s2705_s1 + $0xb0] sm:$0xff]  ;;  %v2035_v43 = vpack.c.bf16 %v993_v41, %v992_v40  ;;  %v97_v44 = vld [vmem:[%s2705_s1 + $0xb8] sm:$0xff]  ;;  %v98_v45 = vld [vmem:[%s2705_s1 + $0xc0] sm:$0xff] }
  0x25   :  { %2026 = vmatpush3.bf16.msra.mxu1 %v2023_v28  ;;  %v99_v46 = vld [vmem:[%s2705_s1 + $0xc8] sm:$0xff]  ;;  %v100_v47 = vld [vmem:[%s2705_s1 + $0xd0] sm:$0xff]  ;;  %v101_v48 = vld [vmem:[%s2705_s1 + $0xd8] sm:$0xff] }
  0x26   :  { %1820 = vmatmul.mubr.msk.f32.gmra.mrb[16].mxu0 %vm113_vm1, %v91_v29  ;;  %2028 = vmatprep.subr.bf16.mxu1 %v2027_v33  ;;  %v102_v49 = vld [vmem:[%s2705_s1 + $0xe0] sm:$0xff]  ;;  %v103_v50 = vld [vmem:[%s2705_s1 + $0xe8] sm:$0xff]  ;;  %v104_v51 = vld [vmem:[%s2705_s1 + $0xf0] sm:$0xff] }
  0x27   :  { %1822 = vmatprep.mubr.msk.f32.mxu0 %vm113_vm1, %v92_v32  ;;  %v105_v52 = vld [vmem:[%s2705_s1 + $0xf8] sm:$0xff]  ;;  %v106_v53 = vld [vmem:[%s2705_s1 + $0x100] sm:$0xff]  ;;  %v107_v54 = vld [vmem:[%s2705_s1 + $0x108] sm:$0xff] }
  0x28   :  { %v108_v55 = vld [vmem:[%s2705_s1 + $0x110] sm:$0xff]  ;;  %v109_v56 = vld [vmem:[%s2705_s1 + $0x118] sm:$0xff]  ;;  %v110_v57 = vld [vmem:[%s2705_s1 + $0x120] sm:$0xff] }
  0x29   :  { %2030 = vmatpush3.bf16.msra.mxu1 %v2027_v33  ;;  %v111_v58 = vld [vmem:[%s2705_s1 + $0x128] sm:$0xf]  ;;  %v35_v59 = vld [vmem:[%s2704_s0] sm:$0xff]  ;;  %v37_v61 = vld [vmem:[%s2704_s0 + $0x10] sm:$0xff] }
  0x2a   :  { %1823 = vmatmul.mubr.msk.f32.gmra.mrb[18].mxu0 %vm113_vm1, %v93_v34  ;;  %2032 = vmatprep.subr.bf16.mxu1 %v2031_v38  ;;  %v36_v60 = vld [vmem:[%s2704_s0 + $0x8] sm:$0xff]  ;;  %v38_v62 = vld [vmem:[%s2704_s0 + $0x18] sm:$0xff]  ;;  %v39_v63 = vld [vmem:[%s2704_s0 + $0x20] sm:$0xff] }
  0x2b   :  { %1825 = vmatprep.mubr.msk.f32.mxu0 %vm113_vm1, %v94_v37  ;;  %v40_v0 = vld [vmem:[%s2704_s0 + $0x28] sm:$0xff]  ;;  %v41_v1 = vld [vmem:[%s2704_s0 + $0x30] sm:$0xff]  ;;  %v42_v2 = vld [vmem:[%s2704_s0 + $0x38] sm:$0xff] }
  0x2c   :  { %v43_v3 = vld [vmem:[%s2704_s0 + $0x40] sm:$0xff]  ;;  %v44_v4 = vld [vmem:[%s2704_s0 + $0x48] sm:$0xff]  ;;  %v45_v5 = vld [vmem:[%s2704_s0 + $0x50] sm:$0xff] }
  0x2d   :  { %2034 = vmatpush3.bf16.msra.mxu1 %v2031_v38  ;;  %v46_v6 = vld [vmem:[%s2704_s0 + $0x58] sm:$0xff]  ;;  %v47_v7 = vld [vmem:[%s2704_s0 + $0x60] sm:$0xff]  ;;  %v48_v8 = vld [vmem:[%s2704_s0 + $0x68] sm:$0xff] }
  0x2e   :  { %1826 = vmatmul.mubr.msk.f32.gmra.mrb[20].mxu0 %vm113_vm1, %v95_v39  ;;  %2036 = vmatprep.subr.bf16.mxu1 %v2035_v43  ;;  %v49_v9 = vld [vmem:[%s2704_s0 + $0x70] sm:$0xff]  ;;  %v50_v10 = vld [vmem:[%s2704_s0 + $0x78] sm:$0xff]  ;;  %v51_v11 = vld [vmem:[%s2704_s0 + $0x80] sm:$0xff] }
  0x2f   :  { %1828 = vmatprep.mubr.msk.f32.mxu0 %vm113_vm1, %v96_v42  ;;  %v52_v12 = vld [vmem:[%s2704_s0 + $0x88] sm:$0xff]  ;;  %v53_v13 = vld [vmem:[%s2704_s0 + $0x90] sm:$0xff]  ;;  %v54_v14 = vld [vmem:[%s2704_s0 + $0x98] sm:$0xff] }
  0x30   :  { %v55_v15 = vld [vmem:[%s2704_s0 + $0xa0] sm:$0xff]  ;;  %v56_v16 = vld [vmem:[%s2704_s0 + $0xa8] sm:$0xff]  ;;  %v57_v17 = vld [vmem:[%s2704_s0 + $0xb0] sm:$0xff] }
  0x31   :  { %2038 = vmatpush3.bf16.msra.mxu1 %v2035_v43  ;;  %v58_v18 = vld [vmem:[%s2704_s0 + $0xb8] sm:$0xff]  ;;  %v59_v19 = vld [vmem:[%s2704_s0 + $0xc0] sm:$0xff]  ;;  %v60_v20 = vld [vmem:[%s2704_s0 + $0xc8] sm:$0xff] }
  0x32   :  { %1829 = vmatmul.mubr.msk.f32.gmra.mrb[22].mxu0 %vm113_vm1, %v97_v44  ;;  %v61_v21 = vld [vmem:[%s2704_s0 + $0xd0] sm:$0xff]  ;;  %v62_v22 = vld [vmem:[%s2704_s0 + $0xd8] sm:$0xff]  ;;  %v63_v23 = vld [vmem:[%s2704_s0 + $0xe0] sm:$0xff] }
  0x33   :  { %1831 = vmatprep.mubr.msk.f32.mxu0 %vm113_vm1, %v98_v45  ;;  %v64_v24 = vld [vmem:[%s2704_s0 + $0xe8] sm:$0xff]  ;;  %v65_v25 = vld [vmem:[%s2704_s0 + $0xf0] sm:$0xff]  ;;  %v66_v26 = vld [vmem:[%s2704_s0 + $0xf8] sm:$0xff] }
  0x34   :  { %v67_v27 = vld [vmem:[%s2704_s0 + $0x100] sm:$0xff]  ;;  %v68_v28 = vld [vmem:[%s2704_s0 + $0x108] sm:$0xff]  ;;  %v69_v29 = vld [vmem:[%s2704_s0 + $0x110] sm:$0xff] }
  0x35   :  { %v70_v30 = vld [vmem:[%s2704_s0 + $0x118] sm:$0xff]  ;;  %v71_v31 = vld [vmem:[%s2704_s0 + $0x120] sm:$0xff]  ;;  %v72_v32 = vld [vmem:[%s2704_s0 + $0x128] sm:$0xf] }
  0x36   :  { %1832 = vmatmul.mubr.msk.f32.gmra.mrb[24].mxu0 %vm113_vm1, %v99_v46  ;;  %v994_v33 = vld [vmem:[%s2709_s5 + $0x60] sm:$0xff]  ;;  %v995_v34 = vld [vmem:[%s2709_s5 + $0x68] sm:$0xff]  ;;  %v996_v36 = vld [vmem:[%s2709_s5 + $0x70] sm:$0xff] }
  0x37   :  { %1834 = vmatprep.mubr.msk.f32.mxu0 %vm113_vm1, %v100_v47  ;;  %v2039_v35 = vpack.c.bf16 %v995_v34, %v994_v33  ;;  %v997_v37 = vld [vmem:[%s2709_s5 + $0x78] sm:$0xff]  ;;  %v2577_v39 = vld [vmem:[%s2708_s4] ss:$0 sm:$0xff] }
  0x38   :  { %v2043_v38 = vpack.c.bf16 %v997_v37, %v996_v36 }
  0x39   :  { %2040 = vmatprep.subr.bf16.mxu1 %v2039_v35 }
  0x3a   :  { %1835 = vmatmul.mubr.msk.f32.gmra.mrb[26].mxu0 %vm113_vm1, %v101_v48  ;;  %2042 = vmatpush3.bf16.msra.mxu1 %v2039_v35 }
  0x3b   :  { %1837 = vmatprep.mubr.msk.f32.mxu0 %vm113_vm1, %v102_v49  ;;  %2044 = vmatprep.subr.bf16.mxu1 %v2043_v38 }
  0x3e   :  { %1838 = vmatmul.mubr.msk.f32.gmra.mrb[28].mxu0 %vm113_vm1, %v103_v50  ;;  %2046 = vmatpush3.bf16.msra.mxu1 %v2043_v38 }
  0x3f   :  { %1840 = vmatprep.mubr.msk.f32.mxu0 %vm113_vm1, %v104_v51 }
  0x42   :  { %1841 = vmatmul.mubr.msk.f32.gmra.mrb[30].mxu0 %vm113_vm1, %v105_v52 }
  0x43   :  { %1843 = vmatprep.mubr.msk.f32.mxu0 %vm113_vm1, %v106_v53 }
  0x46   :  { %1844 = vmatmul.mubr.msk.f32.gmra.mrb[32].mxu0 %vm113_vm1, %v107_v54 }
  0x47   :  { %1846 = vmatprep.mubr.msk.f32.mxu0 %vm113_vm1, %v108_v55 }
  0x4a   :  { %1847 = vmatmul.mubr.msk.f32.gmra.mrb[34].mxu0 %vm113_vm1, %v109_v56 }
  0x4b   :  { %1849 = vmatprep.mubr.msk.f32.mxu0 %vm113_vm1, %v110_v57 }
  0x4e   :  { %1850 = vmatmul.mubr.msk.f32.gmra.mrb[36].mxu0 %vm113_vm1, %v111_v58 }
  0x4f   :  { %1854 = vmatprep.mubr.msk.f32.mxu0 %vm487_vm3, %v35_v59 }
  0x52   :  { %1855 = vmatmul.mubr.msk.f32.vlgmr.msra.gmra.mrb[0].mxu0 %vm487_vm3, %v36_v60 }
  0x53   :  { %1857 = vmatprep.mubr.msk.f32.mxu0 %vm487_vm3, %v37_v61 }
  0x56   :  { %1858 = vmatmul.mubr.msk.f32.gmra.mrb[2].mxu0 %vm487_vm3, %v38_v62 }
  0x57   :  { %1860 = vmatprep.mubr.msk.f32.mxu0 %vm487_vm3, %v39_v63 }
  0x5a   :  { %1861 = vmatmul.mubr.msk.f32.gmra.mrb[4].mxu0 %vm487_vm3, %v40_v0 }
  0x5b   :  { %1863 = vmatprep.mubr.msk.f32.mxu0 %vm487_vm3, %v41_v1 }
  0x5e   :  { %1864 = vmatmul.mubr.msk.f32.gmra.mrb[6].mxu0 %vm487_vm3, %v42_v2 }
  0x5f   :  { %1866 = vmatprep.mubr.msk.f32.mxu0 %vm487_vm3, %v43_v3 }
  0x62   :  { %1867 = vmatmul.mubr.msk.f32.gmra.mrb[8].mxu0 %vm487_vm3, %v44_v4 }
  0x63   :  { %1869 = vmatprep.mubr.msk.f32.mxu0 %vm487_vm3, %v45_v5 }
  0x66   :  { %1870 = vmatmul.mubr.msk.f32.gmra.mrb[10].mxu0 %vm487_vm3, %v46_v6 }
  0x67   :  { %1872 = vmatprep.mubr.msk.f32.mxu0 %vm487_vm3, %v47_v7 }
  0x6a   :  { %1873 = vmatmul.mubr.msk.f32.gmra.mrb[12].mxu0 %vm487_vm3, %v48_v8 }
  0x6b   :  { %1875 = vmatprep.mubr.msk.f32.mxu0 %vm487_vm3, %v49_v9 }
  0x6e   :  { %1876 = vmatmul.mubr.msk.f32.gmra.mrb[14].mxu0 %vm487_vm3, %v50_v10 }
  0x6f   :  { %1878 = vmatprep.mubr.msk.f32.mxu0 %vm487_vm3, %v51_v11 }
  0x72   :  { %1879 = vmatmul.mubr.msk.f32.gmra.mrb[16].mxu0 %vm487_vm3, %v52_v12 }
  0x73   :  { %1881 = vmatprep.mubr.msk.f32.mxu0 %vm487_vm3, %v53_v13 }
  0x76   :  { %1882 = vmatmul.mubr.msk.f32.gmra.mrb[18].mxu0 %vm487_vm3, %v54_v14 }
  0x77   :  { %1884 = vmatprep.mubr.msk.f32.mxu0 %vm487_vm3, %v55_v15 }
  0x7a   :  { %1885 = vmatmul.mubr.msk.f32.gmra.mrb[20].mxu0 %vm487_vm3, %v56_v16 }
  0x7b   :  { %1887 = vmatprep.mubr.msk.f32.mxu0 %vm487_vm3, %v57_v17 }
  0x7e   :  { %1888 = vmatmul.mubr.msk.f32.gmra.mrb[22].mxu0 %vm487_vm3, %v58_v18 }
  0x7f   :  { %1890 = vmatprep.mubr.msk.f32.mxu0 %vm487_vm3, %v59_v19 }
  0x82   :  { %1891 = vmatmul.mubr.msk.f32.gmra.mrb[24].mxu0 %vm487_vm3, %v60_v20 }
  0x83   :  { %1893 = vmatprep.mubr.msk.f32.mxu0 %vm487_vm3, %v61_v21 }
  0x86   :  { %1894 = vmatmul.mubr.msk.f32.gmra.mrb[26].mxu0 %vm487_vm3, %v62_v22 }
  0x87   :  { %1896 = vmatprep.mubr.msk.f32.mxu0 %vm487_vm3, %v63_v23 }
  0x8a   :  { %1897 = vmatmul.mubr.msk.f32.gmra.mrb[28].mxu0 %vm487_vm3, %v64_v24 }
  0x8b   :  { %1899 = vmatprep.mubr.msk.f32.mxu0 %vm487_vm3, %v65_v25 }
  0x8e   :  { %1900 = vmatmul.mubr.msk.f32.gmra.mrb[30].mxu0 %vm487_vm3, %v66_v26 }
  0x8f   :  { %1902 = vmatprep.mubr.msk.f32.mxu0 %vm487_vm3, %v67_v27 }
  0x92   :  { %1903 = vmatmul.mubr.msk.f32.gmra.mrb[32].mxu0 %vm487_vm3, %v68_v28 }
  0x93   :  { %1905 = vmatprep.mubr.msk.f32.mxu0 %vm487_vm3, %v69_v29 }
  0x96   :  { %1906 = vmatmul.mubr.msk.f32.gmra.mrb[34].mxu0 %vm487_vm3, %v70_v30 }
  0x97   :  { %1908 = vmatprep.mubr.msk.f32.mxu0 %vm487_vm3, %v71_v31 }
  0x9a   :  { %1909 = vmatmul.mubr.msk.f32.gmra.mrb[36].mxu0 %vm487_vm3, %v72_v32 }
 0x125   :  { %v1856_v40 = vpop.f32.mrb[0].mxu0 }
 0x126   :  { %v869_v41 = vadd.f32 %v1856_v40, %v2577_v39  ;;  %v672_v42 = vpop.f32.mrb[1].mxu0 }
 0x127   :  { %v868_v43 = vadd.f32 %v2577_v39, %v672_v42 }
 0x128   :  { %v907_v44 = vmul.f32 0.2, %v869_v41 }
 0x129   :  { %v1859_v45 = vpop.f32.mrb[2].mxu0  ;;  %v906_v46 = vmul.f32 0.2, %v868_v43 }
 0x12a   :  { %v871_v47 = vadd.f32 %v1859_v45, %v2577_v39  ;;  %v682_v48 = vpop.f32.mrb[3].mxu0  ;;  %v945_v51 = vmax.f32 %v869_v41, %v907_v44 }
 0x12b   :  { %v870_v49 = vadd.f32 %v2577_v39, %v682_v48  ;;  %v944_v50 = vmax.f32 %v868_v43, %v906_v46 }
 0x12c   :  { %v909_v52 = vmul.f32 0.2, %v871_v47 }
 0x12d   :  { %v908_v53 = vmul.f32 0.2, %v870_v49  ;;  %v1862_v54 = vpop.f32.mrb[4].mxu0  ;;  %1943 = vmatprep.mubr.f32.mxu1 %v944_v50 }
 0x12e   :  { %v873_v55 = vadd.f32 %v1862_v54, %v2577_v39  ;;  %v692_v56 = vpop.f32.mrb[5].mxu0  ;;  %1944 = vmatmul.mubr.f32.vlgmr.msra.gmra.mrb[0].mxu1 %v945_v51  ;;  %v947_v59 = vmax.f32 %v871_v47, %v909_v52 }
 0x12f   :  { %v946_v57 = vmax.f32 %v870_v49, %v908_v53  ;;  %v872_v58 = vadd.f32 %v2577_v39, %v692_v56 }
 0x130   :  { %v911_v60 = vmul.f32 0.2, %v873_v55 }
 0x131   :  { %v910_v61 = vmul.f32 0.2, %v872_v58  ;;  %v1865_v62 = vpop.f32.mrb[6].mxu0  ;;  %1946 = vmatprep.mubr.f32.mxu1 %v946_v57 }
 0x132   :  { %v875_v63 = vadd.f32 %v1865_v62, %v2577_v39  ;;  %v702_v0 = vpop.f32.mrb[7].mxu0  ;;  %1947 = vmatmul.mubr.f32.gmra.mrb[2].mxu1 %v947_v59  ;;  %v949_v3 = vmax.f32 %v873_v55, %v911_v60 }
 0x133   :  { %v948_v1 = vmax.f32 %v872_v58, %v910_v61  ;;  %v874_v2 = vadd.f32 %v2577_v39, %v702_v0 }
 0x134   :  { %v913_v4 = vmul.f32 0.2, %v875_v63 }
 0x135   :  { %v912_v5 = vmul.f32 0.2, %v874_v2  ;;  %v1868_v6 = vpop.f32.mrb[8].mxu0  ;;  %1949 = vmatprep.mubr.f32.mxu1 %v948_v1 }
 0x136   :  { %v877_v7 = vadd.f32 %v1868_v6, %v2577_v39  ;;  %v712_v8 = vpop.f32.mrb[9].mxu0  ;;  %1950 = vmatmul.mubr.f32.gmra.mrb[4].mxu1 %v949_v3  ;;  %v951_v11 = vmax.f32 %v875_v63, %v913_v4 }
 0x137   :  { %v950_v9 = vmax.f32 %v874_v2, %v912_v5  ;;  %v876_v10 = vadd.f32 %v2577_v39, %v712_v8 }
 0x138   :  { %v915_v12 = vmul.f32 0.2, %v877_v7 }
 0x139   :  { %v914_v13 = vmul.f32 0.2, %v876_v10  ;;  %v1871_v14 = vpop.f32.mrb[10].mxu0  ;;  %1952 = vmatprep.mubr.f32.mxu1 %v950_v9 }
 0x13a   :  { %v879_v15 = vadd.f32 %v1871_v14, %v2577_v39  ;;  %v722_v16 = vpop.f32.mrb[11].mxu0  ;;  %1953 = vmatmul.mubr.f32.gmra.mrb[6].mxu1 %v951_v11  ;;  %v953_v19 = vmax.f32 %v877_v7, %v915_v12 }
 0x13b   :  { %v952_v17 = vmax.f32 %v876_v10, %v914_v13  ;;  %v878_v18 = vadd.f32 %v2577_v39, %v722_v16 }
 0x13c   :  { %v917_v20 = vmul.f32 0.2, %v879_v15 }
 0x13d   :  { %v916_v21 = vmul.f32 0.2, %v878_v18  ;;  %v1874_v22 = vpop.f32.mrb[12].mxu0  ;;  %1955 = vmatprep.mubr.f32.mxu1 %v952_v17 }
 0x13e   :  { %v881_v23 = vadd.f32 %v1874_v22, %v2577_v39  ;;  %v732_v24 = vpop.f32.mrb[13].mxu0  ;;  %1956 = vmatmul.mubr.f32.gmra.mrb[8].mxu1 %v953_v19  ;;  %v955_v27 = vmax.f32 %v879_v15, %v917_v20 }
 0x13f   :  { %v954_v25 = vmax.f32 %v878_v18, %v916_v21  ;;  %v880_v26 = vadd.f32 %v2577_v39, %v732_v24 }
 0x140   :  { %v919_v28 = vmul.f32 0.2, %v881_v23 }
 0x141   :  { %v918_v29 = vmul.f32 0.2, %v880_v26  ;;  %v1877_v30 = vpop.f32.mrb[14].mxu0  ;;  %1958 = vmatprep.mubr.f32.mxu1 %v954_v25 }
 0x142   :  { %v883_v31 = vadd.f32 %v1877_v30, %v2577_v39  ;;  %v742_v32 = vpop.f32.mrb[15].mxu0  ;;  %1959 = vmatmul.mubr.f32.gmra.mrb[10].mxu1 %v955_v27  ;;  %v957_v35 = vmax.f32 %v881_v23, %v919_v28 }
 0x143   :  { %v956_v33 = vmax.f32 %v880_v26, %v918_v29  ;;  %v882_v34 = vadd.f32 %v2577_v39, %v742_v32 }
 0x144   :  { %v921_v36 = vmul.f32 0.2, %v883_v31 }
 0x145   :  { %v920_v37 = vmul.f32 0.2, %v882_v34  ;;  %v1880_v38 = vpop.f32.mrb[16].mxu0  ;;  %1961 = vmatprep.mubr.f32.mxu1 %v956_v33 }
 0x146   :  { %v885_v40 = vadd.f32 %v1880_v38, %v2577_v39  ;;  %v752_v41 = vpop.f32.mrb[17].mxu0  ;;  %1962 = vmatmul.mubr.f32.gmra.mrb[12].mxu1 %v957_v35  ;;  %v959_v44 = vmax.f32 %v883_v31, %v921_v36 }
 0x147   :  { %v958_v42 = vmax.f32 %v882_v34, %v920_v37  ;;  %v884_v43 = vadd.f32 %v2577_v39, %v752_v41 }
 0x148   :  { %v923_v45 = vmul.f32 0.2, %v885_v40 }
 0x149   :  { %v922_v46 = vmul.f32 0.2, %v884_v43  ;;  %v1883_v47 = vpop.f32.mrb[18].mxu0  ;;  %1964 = vmatprep.mubr.f32.mxu1 %v958_v42 }
 0x14a   :  { %v887_v48 = vadd.f32 %v1883_v47, %v2577_v39  ;;  %v762_v49 = vpop.f32.mrb[19].mxu0  ;;  %1965 = vmatmul.mubr.f32.gmra.mrb[14].mxu1 %v959_v44  ;;  %v961_v52 = vmax.f32 %v885_v40, %v923_v45 }
 0x14b   :  { %v960_v50 = vmax.f32 %v884_v43, %v922_v46  ;;  %v886_v51 = vadd.f32 %v2577_v39, %v762_v49 }
 0x14c   :  { %v925_v53 = vmul.f32 0.2, %v887_v48 }
 0x14d   :  { %v924_v54 = vmul.f32 0.2, %v886_v51  ;;  %v1886_v55 = vpop.f32.mrb[20].mxu0  ;;  %1967 = vmatprep.mubr.f32.mxu1 %v960_v50 }
 0x14e   :  { %v889_v56 = vadd.f32 %v1886_v55, %v2577_v39  ;;  %v772_v57 = vpop.f32.mrb[21].mxu0  ;;  %1968 = vmatmul.mubr.f32.gmra.mrb[16].mxu1 %v961_v52  ;;  %v963_v60 = vmax.f32 %v887_v48, %v925_v53 }
 0x14f   :  { %v962_v58 = vmax.f32 %v886_v51, %v924_v54  ;;  %v888_v59 = vadd.f32 %v2577_v39, %v772_v57 }
 0x150   :  { %v927_v61 = vmul.f32 0.2, %v889_v56 }
 0x151   :  { %v926_v62 = vmul.f32 0.2, %v888_v59  ;;  %v1889_v63 = vpop.f32.mrb[22].mxu0  ;;  %1970 = vmatprep.mubr.f32.mxu1 %v962_v58 }
 0x152   :  { %v891_v0 = vadd.f32 %v1889_v63, %v2577_v39  ;;  %v782_v1 = vpop.f32.mrb[23].mxu0  ;;  %1971 = vmatmul.mubr.f32.gmra.mrb[18].mxu1 %v963_v60  ;;  %v965_v4 = vmax.f32 %v889_v56, %v927_v61 }
 0x153   :  { %v964_v2 = vmax.f32 %v888_v59, %v926_v62  ;;  %v890_v3 = vadd.f32 %v2577_v39, %v782_v1 }
 0x154   :  { %v929_v5 = vmul.f32 0.2, %v891_v0 }
 0x155   :  { %v928_v6 = vmul.f32 0.2, %v890_v3  ;;  %v1892_v7 = vpop.f32.mrb[24].mxu0  ;;  %1973 = vmatprep.mubr.f32.mxu1 %v964_v2  ;;  %v2620_v2 = vld [vmem:[%s2711_s7] sm:$0x1] }
 0x156   :  { %v893_v8 = vadd.f32 %v1892_v7, %v2577_v39  ;;  %v792_v9 = vpop.f32.mrb[25].mxu0  ;;  %1974 = vmatmul.mubr.f32.gmra.mrb[20].mxu1 %v965_v4  ;;  %v967_v12 = vmax.f32 %v891_v0, %v929_v5  ;;  %v1337_v7 = vld [vmem:[#allocation2] sm:$0x1] }
 0x157   :  { %v966_v10 = vmax.f32 %v890_v3, %v928_v6  ;;  %v892_v11 = vadd.f32 %v2577_v39, %v792_v9  ;;  %v2157_v9 = vmov 0  }
 0x158   :  { %v931_v13 = vmul.f32 0.2, %v893_v8  ;;  %2132 = vset.pattern.permute.xlu0 %v2157_v9 }
 0x159   :  { %v930_v14 = vmul.f32 0.2, %v892_v11  ;;  %v1895_v15 = vpop.f32.mrb[26].mxu0  ;;  %1976 = vmatprep.mubr.f32.mxu1 %v966_v10  ;;  %1340 = vperm.xlu0 %2132, %v1337_v7  }
 0x15a   :  { %v895_v16 = vadd.f32 %v1895_v15, %v2577_v39  ;;  %v802_v17 = vpop.f32.mrb[27].mxu0  ;;  %1977 = vmatmul.mubr.f32.gmra.mrb[22].mxu1 %v967_v12  ;;  %v969_v20 = vmax.f32 %v893_v8, %v931_v13 }
 0x15b   :  { %v968_v18 = vmax.f32 %v892_v11, %v930_v14  ;;  %v894_v19 = vadd.f32 %v2577_v39, %v802_v17 }
 0x15c   :  { %v933_v21 = vmul.f32 0.2, %v895_v16 }
 0x15d   :  { %v932_v22 = vmul.f32 0.2, %v894_v19  ;;  %v1898_v23 = vpop.f32.mrb[28].mxu0  ;;  %1979 = vmatprep.mubr.f32.mxu1 %v968_v18 }
 0x15e   :  { %v897_v24 = vadd.f32 %v1898_v23, %v2577_v39  ;;  %v812_v25 = vpop.f32.mrb[29].mxu0  ;;  %1980 = vmatmul.mubr.f32.gmra.mrb[24].mxu1 %v969_v20  ;;  %v971_v28 = vmax.f32 %v895_v16, %v933_v21 }
 0x15f   :  { %v970_v26 = vmax.f32 %v894_v19, %v932_v22  ;;  %v896_v27 = vadd.f32 %v2577_v39, %v812_v25 }
 0x160   :  { %v935_v29 = vmul.f32 0.2, %v897_v24 }
 0x161   :  { %v934_v30 = vmul.f32 0.2, %v896_v27  ;;  %v1901_v31 = vpop.f32.mrb[30].mxu0  ;;  %1982 = vmatprep.mubr.f32.mxu1 %v970_v26 }
 0x162   :  { %v899_v32 = vadd.f32 %v1901_v31, %v2577_v39  ;;  %v822_v33 = vpop.f32.mrb[31].mxu0  ;;  %1983 = vmatmul.mubr.f32.gmra.mrb[26].mxu1 %v971_v28  ;;  %v973_v36 = vmax.f32 %v897_v24, %v935_v29 }
 0x163   :  { %v972_v34 = vmax.f32 %v896_v27, %v934_v30  ;;  %v898_v35 = vadd.f32 %v2577_v39, %v822_v33 }
 0x164   :  { %v937_v37 = vmul.f32 0.2, %v899_v32 }
 0x165   :  { %v936_v38 = vmul.f32 0.2, %v898_v35  ;;  %v1904_v40 = vpop.f32.mrb[32].mxu0  ;;  %1985 = vmatprep.mubr.f32.mxu1 %v972_v34 }
 0x166   :  { %v901_v41 = vadd.f32 %v1904_v40, %v2577_v39  ;;  %v832_v42 = vpop.f32.mrb[33].mxu0  ;;  %1986 = vmatmul.mubr.f32.gmra.mrb[28].mxu1 %v973_v36  ;;  %v975_v45 = vmax.f32 %v899_v32, %v937_v37 }
 0x167   :  { %v974_v43 = vmax.f32 %v898_v35, %v936_v38  ;;  %v900_v44 = vadd.f32 %v2577_v39, %v832_v42 }
 0x168   :  { %v939_v46 = vmul.f32 0.2, %v901_v41 }
 0x169   :  { %v938_v47 = vmul.f32 0.2, %v900_v44  ;;  %v1907_v48 = vpop.f32.mrb[34].mxu0  ;;  %1988 = vmatprep.mubr.f32.mxu1 %v974_v43 }
 0x16a   :  { %v903_v49 = vadd.f32 %v1907_v48, %v2577_v39  ;;  %v842_v50 = vpop.f32.mrb[35].mxu0  ;;  %1989 = vmatmul.mubr.f32.gmra.mrb[30].mxu1 %v975_v45  ;;  %v977_v53 = vmax.f32 %v901_v41, %v939_v46 }
 0x16b   :  { %v976_v51 = vmax.f32 %v900_v44, %v938_v47  ;;  %v902_v52 = vadd.f32 %v2577_v39, %v842_v50 }
 0x16c   :  { %v941_v54 = vmul.f32 0.2, %v903_v49 }
 0x16d   :  { %v940_v55 = vmul.f32 0.2, %v902_v52  ;;  %v1910_v56 = vpop.f32.mrb[36].mxu0  ;;  %1991 = vmatprep.mubr.f32.mxu1 %v976_v51 }
 0x16e   :  { %v905_v57 = vadd.f32 %v1910_v56, %v2577_v39  ;;  %v852_v58 = vpop.f32.mrb[37].mxu0  ;;  %1992 = vmatmul.mubr.f32.gmra.mrb[32].mxu1 %v977_v53  ;;  %v979_v61 = vmax.f32 %v903_v49, %v941_v54 }
 0x16f   :  { %v978_v59 = vmax.f32 %v902_v52, %v940_v55  ;;  %v904_v60 = vadd.f32 %v2577_v39, %v852_v58  ;;  %v2626_v39 = vld [vmem:[%s2710_s6] ss:$0 sm:$0xff]  ;;  %s2162_s6 = smov [#allocation3]  }
 0x170   :  { %v943_v62 = vmul.f32 0.2, %v905_v57  ;;  %s1532_s7 = sshll.u32 %s2162_s6, 4  ;;  %s1533_s7 = int_to_ptr.vmem [resolvable:$true] %s1532_s7 }
 0x171   :  { %v942_v63 = vmul.f32 0.2, %v904_v60  ;;  %1994 = vmatprep.mubr.f32.mxu1 %v978_v59  ;;  %s2133_s27 = scalar_lea.vmem %s1533_s7, 48  ;;  %s2137_s28 = scalar_lea.vmem %s1533_s7, 64 }
 0x172   :  { %1995 = vmatmul.mubr.f32.gmra.mrb[34].mxu1 %v979_v61  ;;  %v981_v1 = vmax.f32 %v905_v57, %v943_v62  ;;  %p2134_p0 = scmp.ne.s32.totalorder %s1533_s7, %s2133_s27  ;;  %p2138_p1 = scmp.lt.s32.totalorder %s1533_s7, %s1533_s7 }
 0x173   :  { %v980_v0 = vmax.f32 %v904_v60, %v942_v63  ;;  %p2139_p2 = scmp.lt.s32.totalorder %s2137_s28, %s2133_s27 }
 0x175   :  { %1997 = vmatprep.mubr.f32.mxu1 %v980_v0  ;;  %p2140_p3 = por %p2139_p2, %p2138_p1 }
 0x176   :  { %1998 = vmatmul.mubr.f32.gmra.mrb[36].mxu1 %v981_v1 }
 0x177   :  { %1784 = vmatprep.mubr.f32.mxu1 %v2620_v2  ;;  %p2141_p4 = pnand %p2140_p3, %p2134_p0 }
 0x201   :  { %v1945_v3 = vpop.f32.mrb[0].mxu1 }
 0x202   :  { %v1077_v4 = vadd.f32 %v1945_v3, %v2626_v39  ;;  %v1071_v5 = vpop.f32.mrb[1].mxu1 }
 0x203   :  { %v1072_v6 = vadd.f32 %v2626_v39, %v1071_v5 }
 0x204   :  { %v1261_v8 = vmul.f32 0.2, %v1077_v4 }
 0x205   :  { %v1260_v10 = vmul.f32 0.2, %v1072_v6  ;;  %v1948_v11 = vpop.f32.mrb[2].mxu1 }
 0x206   :  { %v1299_v12 = vmax.f32 %v1077_v4, %v1261_v8  ;;  %v1087_v13 = vadd.f32 %v1948_v11, %v2626_v39  ;;  %v1081_v14 = vpop.f32.mrb[3].mxu1 }
 0x207   :  { %v1298_v15 = vmax.f32 %v1072_v6, %v1260_v10  ;;  %v1082_v16 = vadd.f32 %v2626_v39, %v1081_v14 }
 0x208   :  { %v1263_v17 = vmul.f32 0.2, %v1087_v13 }
 0x209   :  { %v2632_v18 = vpack.c.bf16 %v1299_v12, %v1298_v15  ;;  %v1262_v19 = vmul.f32 0.2, %v1082_v16  ;;  %v1951_v20 = vpop.f32.mrb[4].mxu1 }
 0x20a   :  { %v1301_v21 = vmax.f32 %v1087_v13, %v1263_v17  ;;  %v1097_v22 = vadd.f32 %v1951_v20, %v2626_v39  ;;  %v1091_v23 = vpop.f32.mrb[5].mxu1 }
 0x20b   :  { %v1300_v24 = vmax.f32 %v1082_v16, %v1262_v19  ;;  %v1092_v25 = vadd.f32 %v2626_v39, %v1091_v23 }
 0x20c   :  { %v1265_v26 = vmul.f32 0.2, %v1097_v22 }
 0x20d   :  { %v2636_v27 = vpack.c.bf16 %v1301_v21, %v1300_v24  ;;  %v1264_v28 = vmul.f32 0.2, %v1092_v25  ;;  %v1954_v29 = vpop.f32.mrb[6].mxu1 }
 0x20e   :  { %v1303_v30 = vmax.f32 %v1097_v22, %v1265_v26  ;;  %v1107_v31 = vadd.f32 %v1954_v29, %v2626_v39  ;;  %v1101_v32 = vpop.f32.mrb[7].mxu1 }
 0x20f   :  { %v1302_v33 = vmax.f32 %v1092_v25, %v1264_v28  ;;  %v1102_v34 = vadd.f32 %v2626_v39, %v1101_v32 }
 0x210   :  { %v1267_v35 = vmul.f32 0.2, %v1107_v31 }
 0x211   :  { %v2640_v36 = vpack.c.bf16 %v1303_v30, %v1302_v33  ;;  %v1266_v37 = vmul.f32 0.2, %v1102_v34  ;;  %v1957_v38 = vpop.f32.mrb[8].mxu1 }
 0x212   :  { %v1305_v40 = vmax.f32 %v1107_v31, %v1267_v35  ;;  %v1117_v41 = vadd.f32 %v1957_v38, %v2626_v39  ;;  %v1111_v42 = vpop.f32.mrb[9].mxu1 }
 0x213   :  { %v1304_v43 = vmax.f32 %v1102_v34, %v1266_v37  ;;  %v1112_v44 = vadd.f32 %v2626_v39, %v1111_v42 }
 0x214   :  { %v1269_v45 = vmul.f32 0.2, %v1117_v41 }
 0x215   :  { %v2644_v46 = vpack.c.bf16 %v1305_v40, %v1304_v43  ;;  %v1268_v47 = vmul.f32 0.2, %v1112_v44  ;;  %v1960_v48 = vpop.f32.mrb[10].mxu1 }
 0x216   :  { %v1307_v49 = vmax.f32 %v1117_v41, %v1269_v45  ;;  %v1127_v50 = vadd.f32 %v1960_v48, %v2626_v39  ;;  %v1121_v51 = vpop.f32.mrb[11].mxu1 }
 0x217   :  { %v1306_v52 = vmax.f32 %v1112_v44, %v1268_v47  ;;  %v1122_v53 = vadd.f32 %v2626_v39, %v1121_v51 }
 0x218   :  { %v1271_v54 = vmul.f32 0.2, %v1127_v50 }
 0x219   :  { %v2648_v55 = vpack.c.bf16 %v1307_v49, %v1306_v52  ;;  %v1270_v56 = vmul.f32 0.2, %v1122_v53  ;;  %v1963_v57 = vpop.f32.mrb[12].mxu1 }
 0x21a   :  { %v1309_v58 = vmax.f32 %v1127_v50, %v1271_v54  ;;  %v1137_v59 = vadd.f32 %v1963_v57, %v2626_v39  ;;  %v1131_v60 = vpop.f32.mrb[13].mxu1 }
 0x21b   :  { %v1308_v61 = vmax.f32 %v1122_v53, %v1270_v56  ;;  %v1132_v62 = vadd.f32 %v2626_v39, %v1131_v60 }
 0x21c   :  { %v1273_v63 = vmul.f32 0.2, %v1137_v59 }
 0x21d   :  { %v2652_v0 = vpack.c.bf16 %v1309_v58, %v1308_v61  ;;  %v1272_v1 = vmul.f32 0.2, %v1132_v62  ;;  %v1966_v3 = vpop.f32.mrb[14].mxu1 }
 0x21e   :  { %v1311_v4 = vmax.f32 %v1137_v59, %v1273_v63  ;;  %v1147_v5 = vadd.f32 %v1966_v3, %v2626_v39  ;;  %v1141_v6 = vpop.f32.mrb[15].mxu1 }
 0x21f   :  { %v1310_v7 = vmax.f32 %v1132_v62, %v1272_v1  ;;  %v1142_v8 = vadd.f32 %v2626_v39, %v1141_v6 }
 0x220   :  { %v1275_v9 = vmul.f32 0.2, %v1147_v5 }
 0x221   :  { %v2656_v10 = vpack.c.bf16 %v1311_v4, %v1310_v7  ;;  %v1274_v11 = vmul.f32 0.2, %v1142_v8  ;;  %v1969_v12 = vpop.f32.mrb[16].mxu1 }
 0x222   :  { %v1313_v13 = vmax.f32 %v1147_v5, %v1275_v9  ;;  %v1157_v14 = vadd.f32 %v1969_v12, %v2626_v39  ;;  %v1151_v15 = vpop.f32.mrb[17].mxu1 }
 0x223   :  { %v1312_v16 = vmax.f32 %v1142_v8, %v1274_v11  ;;  %v1152_v17 = vadd.f32 %v2626_v39, %v1151_v15 }
 0x224   :  { %v1277_v19 = vmul.f32 0.2, %v1157_v14 }
 0x225   :  { %v2660_v20 = vpack.c.bf16 %v1313_v13, %v1312_v16  ;;  %v1276_v21 = vmul.f32 0.2, %v1152_v17  ;;  %v1972_v22 = vpop.f32.mrb[18].mxu1 }
 0x226   :  { %v1315_v23 = vmax.f32 %v1157_v14, %v1277_v19  ;;  %v1167_v24 = vadd.f32 %v1972_v22, %v2626_v39  ;;  %v1161_v25 = vpop.f32.mrb[19].mxu1 }
 0x227   :  { %v1314_v26 = vmax.f32 %v1152_v17, %v1276_v21  ;;  %v1162_v28 = vadd.f32 %v2626_v39, %v1161_v25 }
 0x228   :  { %v1279_v29 = vmul.f32 0.2, %v1167_v24 }
 0x229   :  { %v1278_v30 = vmul.f32 0.2, %v1162_v28  ;;  %v1975_v31 = vpop.f32.mrb[20].mxu1  ;;  %v2047_v32 = vpack.c.bf16 %v1315_v23, %v1314_v26 }
 0x22a   :  { %v1317_v33 = vmax.f32 %v1167_v24, %v1279_v29  ;;  %v1177_v34 = vadd.f32 %v1975_v31, %v2626_v39  ;;  %v1171_v35 = vpop.f32.mrb[21].mxu1 }
 0x22b   :  { %v1316_v37 = vmax.f32 %v1162_v28, %v1278_v30  ;;  %v1172_v38 = vadd.f32 %v2626_v39, %v1171_v35  ;;  %2048 = vmatprep.subr.bf16.mxu1 %v2047_v32 }
 0x22c   :  { %v1281_v40 = vmul.f32 0.2, %v1177_v34  ;;  %2050 = vmatpush3.bf16.xpose.msra.mxu1 %v2632_v18 }
 0x22d   :  { %v1280_v41 = vmul.f32 0.2, %v1172_v38  ;;  %v1978_v42 = vpop.f32.mrb[22].mxu1  ;;  %v2051_v43 = vpack.c.bf16 %v1317_v33, %v1316_v37 }
 0x22e   :  { %v1319_v44 = vmax.f32 %v1177_v34, %v1281_v40  ;;  %v1187_v45 = vadd.f32 %v1978_v42, %v2626_v39  ;;  %v1181_v47 = vpop.f32.mrb[23].mxu1 }
 0x22f   :  { %v1318_v48 = vmax.f32 %v1172_v38, %v1280_v41  ;;  %v1182_v49 = vadd.f32 %v2626_v39, %v1181_v47  ;;  %2052 = vmatprep.subr.bf16.mxu1 %v2051_v43 }
 0x230   :  { %v1283_v50 = vmul.f32 0.2, %v1187_v45 }
 0x231   :  { %v1282_v51 = vmul.f32 0.2, %v1182_v49  ;;  %v1981_v52 = vpop.f32.mrb[24].mxu1  ;;  %v2055_v53 = vpack.c.bf16 %v1319_v44, %v1318_v48 }
 0x232   :  { %v1321_v54 = vmax.f32 %v1187_v45, %v1283_v50  ;;  %v1197_v56 = vadd.f32 %v1981_v52, %v2626_v39  ;;  %v1191_v57 = vpop.f32.mrb[25].mxu1 }
 0x233   :  { %v1320_v18 = vmax.f32 %v1182_v49, %v1282_v51  ;;  %v1192_v58 = vadd.f32 %v2626_v39, %v1191_v57 }
 0x234   :  { %v1285_v59 = vmul.f32 0.2, %v1197_v56  ;;  %2054 = vmatpush3.bf16.xpose.msra.mxu1 %v2636_v27 }
 0x235   :  { %v1284_v60 = vmul.f32 0.2, %v1192_v58  ;;  %v1984_v61 = vpop.f32.mrb[26].mxu1  ;;  %2056 = vmatprep.subr.bf16.mxu1 %v2055_v53  ;;  %v2059_v62 = vpack.c.bf16 %v1321_v54, %v1320_v18 }
 0x236   :  { %v1323_v63 = vmax.f32 %v1197_v56, %v1285_v59  ;;  %v1207_v1 = vadd.f32 %v1984_v61, %v2626_v39  ;;  %v1201_v3 = vpop.f32.mrb[27].mxu1  ;;  %v2158_v61 = vmov 0.0|0.0  }
 0x237   :  { %v1322_v4 = vmax.f32 %v1192_v58, %v1284_v60  ;;  %v1202_v5 = vadd.f32 %v2626_v39, %v1201_v3 }
 0x238   :  { %v1287_v6 = vmul.f32 0.2, %v1207_v1 }
 0x239   :  { %v1286_v7 = vmul.f32 0.2, %v1202_v5  ;;  %v1987_v8 = vpop.f32.mrb[28].mxu1  ;;  %v2063_v9 = vpack.c.bf16 %v1323_v63, %v1322_v4 }
 0x23a   :  { %v1325_v11 = vmax.f32 %v1207_v1, %v1287_v6  ;;  %v1217_v12 = vadd.f32 %v1987_v8, %v2626_v39  ;;  %v1211_v13 = vpop.f32.mrb[29].mxu1 }
 0x23b   :  { %v1324_v27 = vmax.f32 %v1202_v5, %v1286_v7  ;;  %v1212_v14 = vadd.f32 %v2626_v39, %v1211_v13 }
 0x23c   :  { %v1289_v15 = vmul.f32 0.2, %v1217_v12  ;;  %2058 = vmatpush3.bf16.xpose.msra.mxu1 %v2640_v36 }
 0x23d   :  { %v1288_v16 = vmul.f32 0.2, %v1212_v14  ;;  %v1990_v17 = vpop.f32.mrb[30].mxu1  ;;  %2060 = vmatprep.subr.bf16.mxu1 %v2059_v62  ;;  %v2067_v19 = vpack.c.bf16 %v1325_v11, %v1324_v27  ;;  %v1341_v62 = vpop.permute.xlu0 %1340  ;;  %v2161_v11 = vmov 1966171168  }
 0x23e   :  { %v1327_v21 = vmax.f32 %v1217_v12, %v1289_v15  ;;  %v1227_v22 = vadd.f32 %v1990_v17, %v2626_v39  ;;  %v1221_v23 = vpop.f32.mrb[31].mxu1  ;;  %v1499_v12 = vunpack.c.l.s4 %v2161_v11 }
 0x23f   :  { %v1326_v24 = vmax.f32 %v1212_v14, %v1288_v16  ;;  %v1222_v25 = vadd.f32 %v2626_v39, %v1221_v23 }
 0x240   :  { %v1291_v26 = vmul.f32 0.2, %v1227_v22  ;;  %v1500_v13 = vunpack.c.0.s8 %v1499_v12 }
 0x241   :  { %v1290_v28 = vmul.f32 0.2, %v1222_v25  ;;  %v1993_v29 = vpop.f32.mrb[32].mxu1  ;;  %v2071_v30 = vpack.c.bf16 %v1327_v21, %v1326_v24 }
 0x242   :  { %v1329_v31 = vmax.f32 %v1227_v22, %v1291_v26  ;;  %v1237_v32 = vadd.f32 %v1993_v29, %v2626_v39  ;;  %v1231_v33 = vpop.f32.mrb[33].mxu1 }
 0x243   :  { %v1328_v36 = vmax.f32 %v1222_v25, %v1290_v28  ;;  %v1232_v34 = vadd.f32 %v2626_v39, %v1231_v33 }
 0x244   :  { %v1293_v35 = vmul.f32 0.2, %v1237_v32  ;;  %2062 = vmatpush3.bf16.xpose.msra.mxu1 %v2644_v46 }
 0x245   :  { %v1292_v37 = vmul.f32 0.2, %v1232_v34  ;;  %v1996_v38 = vpop.f32.mrb[34].mxu1  ;;  %2064 = vmatprep.subr.bf16.mxu1 %v2063_v9  ;;  %v2075_v40 = vpack.c.bf16 %v1329_v31, %v1328_v36 }
 0x246   :  { %v1331_v41 = vmax.f32 %v1237_v32, %v1293_v35  ;;  %v1247_v42 = vadd.f32 %v1996_v38, %v2626_v39  ;;  %v1241_v43 = vpop.f32.mrb[35].mxu1 }
 0x247   :  { %v1330_v44 = vmax.f32 %v1232_v34, %v1292_v37  ;;  %v1242_v45 = vadd.f32 %v2626_v39, %v1241_v43 }
 0x248   :  { %v1295_v47 = vmul.f32 0.2, %v1247_v42 }
 0x249   :  { %v2080_v48 = vpack.c.bf16 %v1331_v41, %v1330_v44  ;;  %v1294_v49 = vmul.f32 0.2, %v1242_v45  ;;  %v1999_v50 = vpop.f32.mrb[36].mxu1 }
 0x24a   :  { %v1333_v51 = vmax.f32 %v1247_v42, %v1295_v47  ;;  %v1257_v52 = vadd.f32 %v1999_v50, %v2626_v39  ;;  %v1251_v53 = vpop.f32.mrb[37].mxu1 }
 0x24b   :  { %v1332_v46 = vmax.f32 %v1242_v45, %v1294_v49  ;;  %v1252_v54 = vadd.f32 %v2626_v39, %v1251_v53  ;;  %v2160_v39 = vmov 0.0  }
 0x24c   :  { %v1297_v56 = vmul.f32 0.2, %v1257_v52  ;;  %2066 = vmatpush3.bf16.xpose.msra.mxu1 %v2648_v55  ;;  %v1343_v55 = vlaneseq }
 0x24d   :  { %v2083_v57 = vpack.c.bf16 %v1333_v51, %v1332_v46  ;;  %v1296_v18 = vmul.f32 0.2, %v1252_v54  ;;  %2068 = vmatprep.subr.bf16.mxu1 %v2067_v19 }
 0x24e   :  { %v1335_v58 = vmax.f32 %v1257_v52, %v1297_v56  ;;  %vm1523_vm5 = vcmp.lt.s32.totalorder %v1343_v55, 300 }
 0x24f   :  { %v1334_v59 = vmax.f32 %v1252_v54, %v1296_v18 }
 0x251   :  { %v2086_v60 = vpack.c.bf16 %v1335_v58, %v1334_v59 }
 0x254   :  { %2070 = vmatpush3.bf16.xpose.msra.mxu1 %v2652_v0  ;;  %v1344_v0 = vshrl.u32 %v1343_v55, 7 }
 0x255   :  { %2072 = vmatprep.subr.bf16.mxu1 %v2071_v30 }
 0x256   :  { %v1503_v15 = vsub.s32 %v1500_v13, %v1344_v0 }
 0x25c   :  { %2074 = vmatpush3.bf16.xpose.msra.mxu1 %v2656_v10  ;;  %v1345_v10 = vsub.s32 0, %v1344_v0 }
 0x25d   :  { %2076 = vmatprep.subr.bf16.mxu1 %v2075_v40 }
 0x25e   :  { %v1346_v63 = vrot.slane %v1341_v62, %v1345_v10 }
 0x264   :  { %2078 = vmatpush3.bf16.xpose.msra.mxu1 %v2660_v20 }
 0x265   :  { %2079 = vmatprep.subr.bf16.mxu1 %v2158_v61 }
 0x26b   :  { %1785 = vmatmul.mubr.f32.vlgmr.msra.gmra.mrb[38].mxu1 %v2620_v2 }
 0x26c   :  { %2081 = vmatpush3.bf16.xpose.msra.mxu1 %v2080_v48  ;;  %2012 = vmatprep.mubr.msk.f32.mxu1 %vm2159_vm4, %v2160_v39 }
 0x26d   :  { %2082 = vmatprep.subr.bf16.mxu1 %v2158_v61 }
 0x274   :  { %2084 = vmatpush3.bf16.xpose.msra.mxu1 %v2083_v57 }
 0x275   :  { %2085 = vmatprep.subr.bf16.mxu1 %v2158_v61 }
 0x27c   :  { %2087 = vmatpush3.bf16.xpose.msra.mxu1 %v2086_v60 }
 0x283   :  { %2013 = vmatmul.mubr.f32.vlgmr.msra.gmra.mrb[40].mxu1 %v2620_v2 }
 0x33e   :  { %v1413_v20 = vpop.f32.mrb[38].mxu1 }
 0x33f   :  { %v1414_v1 = vadd.f32 %v1413_v20, %v1346_v63  ;;  %v1415_v3 = vpop.f32.mrb[39].mxu1 }
 0x340   :  { %v1416_v4 = vadd.f32 %v1415_v3, %v1346_v63 }
 0x341   :  { %v1488_v5 = vmul.f32 0.2, %v1414_v1 }
 0x342   :  { %v1489_v6 = vmul.f32 0.2, %v1416_v4 }
 0x343   :  { %v1491_v7 = vmax.f32 %v1414_v1, %v1488_v5 }
 0x344   :  { %v1492_v8 = vmax.f32 %v1416_v4, %v1489_v6 }
 0x346   :  { %v1497_v9 = vcombine.low %v1491_v7, %v1492_v8 }
 0x348   :  { %v1504_v19 = vrot.slane %v1497_v9, %v1503_v15 }
 0x356   :  { %v1484_v27 = vpop.f32.mrb[40].mxu1 }
 0x357   :  { %v1485_v14 = vadd.f32 %v1484_v27, %v1346_v63  ;;  %v2014_v2 = vpop.f32.mrb[41].mxu1 }
 0x359   :  { %v1490_v16 = vmul.f32 0.2, %v1485_v14 }
 0x35b   :  { %v1493_v17 = vmax.f32 %v1485_v14, %v1490_v16 }
 0x35d   :  { %v1511_v21 = vrot.slane %v1493_v17, %v1503_v15 }
 0x35f   :  { %v1512_v22 = vcombine.low %v1504_v19, %v1511_v21 }
 0x361   :  { %v1519_v23 = vrot.slane %v1512_v22, %v1503_v15 }
 0x363   :  { %1525 = vst.msk [vmem:[#allocation3] sm:$0x7] %vm1523_vm5, %v1519_v23 }
 0x364   :  { %2144 = shalt.err (!%p2141_p4)
}
 0x365   :  { %s2145_s10 = scalar_lea.hbm %s2713_s9, 48 }
 0x366   :  { %p2146_p5 = scmp.ne.s32.totalorder %s2713_s9, %s2145_s10  ;;  %p2149_p6 = scmp.lt.u32.totalorder %s2145_s10, %s2713_s9 }
 0x368   :  { %p2151_p7 = pnand %p2149_p6, %p2146_p5 }
 0x36a   :  { %2154 = shalt.err (!%p2151_p7)
}
 0x36b   :  { %1535 = dma.vmem_to_hbm [thread:$0]  %s1533_s7, 48, %s2713_s9, [#allocation4]  }
 0x36c   :  { %2155 = dma.done.wait [#allocation4], 48  }
 0x36d   :  { %2156 = vsyncadd [#allocation4], 4294967248 }
 0x36e   :  { %1539 = vsyncpa [#allocation4], 1 }

</bundles_post_ra>
